<compile_context>
chip_gen: v7x
topology: tpu7x:2x2x1
jax: 0.10.0
libtpu: 0.0.40
codegen_flags: <defaults>
</compile_context>

<pallas_src>
import jax
import jax.numpy as jnp
from jax.experimental import pallas as pl
from jax.experimental.pallas import tpu as pltpu


# ---------------------------------------------------------------------------
# Kernels
# ---------------------------------------------------------------------------

def dqn_kernel(x_ref, w1_ref, b1_ref, w2_ref, b2_ref, w3_ref, b3_ref, o_ref):
    # Layer 1: Linear + ReLU (MXU matmul, f32 accumulate; bias add + ReLU on VPU).
    h1 = jnp.dot(x_ref[...], w1_ref[...], preferred_element_type=jnp.float32)
    h1 = jnp.maximum(h1 + b1_ref[...], 0.0).astype(w2_ref.dtype)
    # Layer 2: Linear + ReLU.
    h2 = jnp.dot(h1, w2_ref[...], preferred_element_type=jnp.float32)
    h2 = jnp.maximum(h2 + b2_ref[...], 0.0).astype(w3_ref.dtype)
    # Layer 3: Linear (Q-values). Output block is the true (bb, num_actions) shape —
    # no lane padding, so no 64x HBM write amplification.
    q = jnp.dot(h2, w3_ref[...], preferred_element_type=jnp.float32) + b3_ref[...]
    o_ref[...] = q.astype(o_ref.dtype)


def dqn_act_kernel(x_ref, w1_ref, b1_ref, w2_ref, b2_ref, w3_ref, b3_ref, a_ref):
    # Single-state forward + fused greedy argmax (the hot inner loop of DQN.act()).
    h1 = jnp.dot(x_ref[...], w1_ref[...], preferred_element_type=jnp.float32)
    h1 = jnp.maximum(h1 + b1_ref[...], 0.0).astype(w2_ref.dtype)
    h2 = jnp.dot(h1, w2_ref[...], preferred_element_type=jnp.float32)
    h2 = jnp.maximum(h2 + b2_ref[...], 0.0).astype(w3_ref.dtype)
    q = jnp.dot(h2, w3_ref[...], preferred_element_type=jnp.float32) + b3_ref[...]  # (1, A)
    # First-max argmax over the (unpadded) action axis, kept in vector registers:
    # max -> mark winners -> take the smallest winning index (PyTorch tie-break).
    m = jnp.max(q, axis=-1, keepdims=True)
    idx = jax.lax.broadcasted_iota(jnp.int32, q.shape, 1)
    cand = jnp.where(q >= m, idx, jnp.iinfo(jnp.int32).max)
    a_ref[...] = jnp.min(cand, axis=-1, keepdims=True)  # (1, 1) int32


# ---------------------------------------------------------------------------
# Wrappers
# ---------------------------------------------------------------------------

def _batch_blocking(B, block_b):
    """Pick (bb, num_blocks, padded_B).

    Preferences (per perf review): no wrapper-side padding, >= 2 grid steps when
    B >= 16 (so v7x's second TensorCore gets work), bb <= block_b, and bb a
    multiple of 8 whenever there is more than one block (the (8,128) rule).
    """
    if B < 16:
        return B, 1, B                                   # single block == full array
    num_blocks = max(2, pl.cdiv(B, block_b))
    bb = pl.cdiv(B, num_blocks)
    if B % num_blocks == 0 and bb % 8 == 0:
        return bb, num_blocks, B                         # exact split (power-of-two replay batch)
    bb = pl.cdiv(bb, 8) * 8                              # fallback: round up, pad the batch
    num_blocks = pl.cdiv(B, bb)
    return bb, num_blocks, num_blocks * bb


def dqn_forward(x, w1, b1, w2, b2, w3, b3, *, block_b=2048):
    """Fused DQN forward. x: (B, num_inputs) -> (B, num_actions) f32 Q-values.

    Pass pre-cast bf16 weights (see cast_params) for the v6e/v7x training path;
    accumulation is always f32. Keep f32 weights on v5e / for exact parity.
    """
    B, num_inputs = x.shape
    num_actions = w3.shape[1]

    if x.dtype != w1.dtype:          # match pre-cast weights (tiny per-call cast of x only)
        x = x.astype(w1.dtype)

    bb, num_blocks, b_padded = _batch_blocking(B, block_b)
    if b_padded != B:                # only hit for awkward (non power-of-two) batches
        x = jnp.pad(x, ((0, b_padded - B), (0, 0)))

    def resident(arr):               # weights/biases: same block every step -> stay in VMEM
        return pl.BlockSpec(arr.shape, lambda i: (0, 0))

    out = pl.pallas_call(
        dqn_kernel,
        out_shape=jax.ShapeDtypeStruct((b_padded, num_actions), jnp.float32),
        grid=(num_blocks,),
        in_specs=[
            pl.BlockSpec((bb, num_inputs), lambda i: (i, 0)),   # activation stream
            resident(w1), resident(b1),
            resident(w2), resident(b2),
            resident(w3), resident(b3),
        ],
        out_specs=pl.BlockSpec((bb, num_actions), lambda i: (i, 0)),
        compiler_params=pltpu.CompilerParams(
            dimension_semantics=("parallel",),   # shard batch tiles across TCs on v7x
        ),
    )(x, w1, b1, w2, b2, w3, b3)

    return out if b_padded == B else out[:B]


def dqn_act(state, w1, b1, w2, b2, w3, b3):
    """act() latency path: single state (1, num_inputs) -> greedy action (1,1) int32.

    Forward + argmax fused in one kernel; no batch/action padding, no separate
    argmax launch, no wrapper slice.
    """
    # TODO(synk): epsilon-greedy exploration branch (host Python RNG) stays in Python.
    if state.dtype != w1.dtype:
        state = state.astype(w1.dtype)
    return pl.pallas_call(
        dqn_act_kernel,
        out_shape=jax.ShapeDtypeStruct((1, 1), jnp.int32),
    )(state, w1, b1, w2, b2, w3, b3)


def cast_params(params, compute_dtype):
    """Pre-cast the weight matrices ONCE (outside the step loop) for the bf16 MXU
    path on v6e/v7x; biases stay f32 (added after the f32 accumulate). Skip on v5e."""
    w1, b1, w2, b2, w3, b3 = params
    return (w1.astype(compute_dtype), b1,
            w2.astype(compute_dtype), b2,
            w3.astype(compute_dtype), b3)


def init_params(key, num_inputs, num_actions, hidden=128):
    """Deterministic PyTorch-style init: U(-1/sqrt(fan_in), 1/sqrt(fan_in))."""
    ks = jax.random.split(key, 6)

    def lin(kw, kb, fan_in, fan_out):
        bound = 1.0 / jnp.sqrt(jnp.float32(fan_in))
        w = jax.random.uniform(kw, (fan_in, fan_out), jnp.float32, -bound, bound)
        b = jax.random.uniform(kb, (1, fan_out), jnp.float32, -bound, bound)
        return w, b

    w1, b1 = lin(ks[0], ks[1], num_inputs, hidden)
    w2, b2 = lin(ks[2], ks[3], hidden, hidden)
    w3, b3 = lin(ks[4], ks[5], hidden, num_actions)
    return w1, b1, w2, b2, w3, b3


if __name__ == "__main__":
    key = jax.random.PRNGKey(0)
    k_x, k_p, k_s = jax.random.split(key, 3)

    # CartPole-like DQN: 4 state features, 2 actions; replay-buffer-sized batch.
    batch, num_inputs, num_actions = 256, 4, 2

    x = jax.random.normal(k_x, (batch, num_inputs), dtype=jnp.float32)
    params = init_params(k_p, num_inputs, num_actions)
    w1, b1, w2, b2, w3, b3 = params

    # Pure-JAX reference (same math, no Pallas).
    h = jnp.maximum(x @ w1 + b1, 0.0)
    h = jnp.maximum(h @ w2 + b2, 0.0)
    ref = h @ w3 + b3

    # --- f32 path (exact PyTorch parity). B=256 -> 2 blocks of 128, no wrapper pad.
    q_f32 = dqn_forward(x, *params)
    jax.block_until_ready(q_f32)
    assert q_f32.shape == (batch, num_actions)
    assert jnp.allclose(q_f32, ref, atol=1e-5, rtol=1e-5)

    # --- bf16 pre-cast weights (v6e/v7x training throughput; f32 accumulate).
    bf16_params = cast_params(params, jnp.bfloat16)
    q_bf16 = dqn_forward(x, *bf16_params)
    jax.block_until_ready(q_bf16)
    assert q_bf16.shape == (batch, num_actions)
    assert jnp.allclose(q_bf16, ref, atol=1e-1, rtol=1e-1)

    # --- awkward batch size exercises the padded-fallback path.
    q_odd = dqn_forward(x[:40], *params)
    jax.block_until_ready(q_odd)
    assert q_odd.shape == (40, num_actions)
    assert jnp.allclose(q_odd, ref[:40], atol=1e-5, rtol=1e-5)

    # --- act() latency path: single state -> fused greedy action.
    state = jax.random.normal(k_s, (1, num_inputs), dtype=jnp.float32)
    action = dqn_act(state, *params)
    jax.block_until_ready(action)
    hs = jnp.maximum(state @ w1 + b1, 0.0)
    hs = jnp.maximum(hs @ w2 + b2, 0.0)
    qs = hs @ w3 + b3
    assert action.shape == (1, 1)
    assert 0 <= int(action[0, 0]) < num_actions
    assert int(action[0, 0]) == int(jnp.argmax(qs[0]))

    print("KERNEL_OK")
</pallas_src>

<mosaic_0001>
module attributes {stable_mosaic.version = 11 : i64} {
  func.func @dqn_kernel(%arg0: i32, %arg1: memref<128x4xf32, #tpu.memory_space<vmem>>, %arg2: memref<4x128xf32, #tpu.memory_space<vmem>>, %arg3: memref<1x128xf32, #tpu.memory_space<vmem>>, %arg4: memref<128x128xf32, #tpu.memory_space<vmem>>, %arg5: memref<1x128xf32, #tpu.memory_space<vmem>>, %arg6: memref<128x2xf32, #tpu.memory_space<vmem>>, %arg7: memref<1x2xf32, #tpu.memory_space<vmem>>, %arg8: memref<128x2xf32, #tpu.memory_space<vmem>>) attributes {dimension_semantics = [#tpu.dimension_semantics<parallel>], iteration_bounds = array<i64: 2>, scalar_prefetch = 0 : i64, scratch_operands = 0 : i64, tpu.core_type = #tpu.core_type<tc>, window_params = [{transform_indices = @transform_0, window_bounds = array<i64: 128, 4>}, {pipeline_mode = #tpu.pipeline_mode<synchronous>, transform_indices = @transform_1, window_bounds = array<i64: 4, 128>}, {pipeline_mode = #tpu.pipeline_mode<synchronous>, transform_indices = @transform_2, window_bounds = array<i64: 1, 128>}, {pipeline_mode = #tpu.pipeline_mode<synchronous>, transform_indices = @transform_3, window_bounds = array<i64: 128, 128>}, {pipeline_mode = #tpu.pipeline_mode<synchronous>, transform_indices = @transform_4, window_bounds = array<i64: 1, 128>}, {pipeline_mode = #tpu.pipeline_mode<synchronous>, transform_indices = @transform_5, window_bounds = array<i64: 128, 2>}, {pipeline_mode = #tpu.pipeline_mode<synchronous>, transform_indices = @transform_6, window_bounds = array<i64: 1, 2>}, {transform_indices = @transform_7, window_bounds = array<i64: 128, 2>}]} {
    %c0 = arith.constant 0 : index
    %c0_0 = arith.constant 0 : index
    %0 = vector.load %arg1[%c0, %c0_0] : memref<128x4xf32, #tpu.memory_space<vmem>>, vector<128x4xf32>
    %c0_1 = arith.constant 0 : index
    %c0_2 = arith.constant 0 : index
    %1 = vector.load %arg2[%c0_1, %c0_2] : memref<4x128xf32, #tpu.memory_space<vmem>>, vector<4x128xf32>
    %cst = arith.constant dense<0.000000e+00> : vector<128x128xf32>
    %2 = tpu.matmul %0, %1, %cst {dimension_numbers = #tpu.dot_dimension_numbers<[1], [0], [0], [1], [0, 0, 1, 1], [], []>} : vector<128x4xf32>, vector<4x128xf32>, vector<128x128xf32> -> vector<128x128xf32>
    %c0_3 = arith.constant 0 : index
    %c0_4 = arith.constant 0 : index
    %3 = vector.load %arg3[%c0_3, %c0_4] : memref<1x128xf32, #tpu.memory_space<vmem>>, vector<1x128xf32>
    %4 = vector.broadcast %3 : vector<1x128xf32> to vector<128x128xf32>
    %5 = arith.addf %2, %4 : vector<128x128xf32>
    %cst_5 = arith.constant 0.000000e+00 : f32
    %6 = vector.broadcast %cst_5 : f32 to vector<128x128xf32>
    %7 = arith.maximumf %5, %6 : vector<128x128xf32>
    %c0_6 = arith.constant 0 : index
    %c0_7 = arith.constant 0 : index
    %8 = vector.load %arg4[%c0_6, %c0_7] : memref<128x128xf32, #tpu.memory_space<vmem>>, vector<128x128xf32>
    %cst_8 = arith.constant dense<0.000000e+00> : vector<128x128xf32>
    %9 = tpu.matmul %7, %8, %cst_8 {dimension_numbers = #tpu.dot_dimension_numbers<[1], [0], [0], [1], [0, 0, 1, 1], [], []>} : vector<128x128xf32>, vector<128x128xf32>, vector<128x128xf32> -> vector<128x128xf32>
    %c0_9 = arith.constant 0 : index
    %c0_10 = arith.constant 0 : index
    %10 = vector.load %arg5[%c0_9, %c0_10] : memref<1x128xf32, #tpu.memory_space<vmem>>, vector<1x128xf32>
    %11 = vector.broadcast %10 : vector<1x128xf32> to vector<128x128xf32>
    %12 = arith.addf %9, %11 : vector<128x128xf32>
    %cst_11 = arith.constant 0.000000e+00 : f32
    %13 = vector.broadcast %cst_11 : f32 to vector<128x128xf32>
    %14 = arith.maximumf %12, %13 : vector<128x128xf32>
    %c0_12 = arith.constant 0 : index
    %c0_13 = arith.constant 0 : index
    %15 = vector.load %arg6[%c0_12, %c0_13] : memref<128x2xf32, #tpu.memory_space<vmem>>, vector<128x2xf32>
    %cst_14 = arith.constant dense<0.000000e+00> : vector<128x2xf32>
    %16 = tpu.matmul %14, %15, %cst_14 {dimension_numbers = #tpu.dot_dimension_numbers<[1], [0], [0], [1], [0, 0, 1, 1], [], []>} : vector<128x128xf32>, vector<128x2xf32>, vector<128x2xf32> -> vector<128x2xf32>
    %c0_15 = arith.constant 0 : index
    %c0_16 = arith.constant 0 : index
    %17 = vector.load %arg7[%c0_15, %c0_16] : memref<1x2xf32, #tpu.memory_space<vmem>>, vector<1x2xf32>
    %18 = vector.broadcast %17 : vector<1x2xf32> to vector<128x2xf32>
    %19 = arith.addf %16, %18 : vector<128x2xf32>
    %c0_17 = arith.constant 0 : index
    %c0_18 = arith.constant 0 : index
    %20 = vector.load %arg8[%c0_17, %c0_18] : memref<128x2xf32, #tpu.memory_space<vmem>>, vector<128x2xf32>
    tpu.vector_store %arg8[%c0_17, %c0_18], %19 {strides = array<i32>} : memref<128x2xf32, #tpu.memory_space<vmem>>, vector<128x2xf32>,
    return
  }
  func.func @transform_0(%arg0: i32) -> (i32, i32) {
    %c0_i32 = arith.constant 0 : i32
    %c0_i32_0 = arith.constant 0 : i32
    return %arg0, %c0_i32 : i32, i32
  }
  func.func @transform_1(%arg0: i32) -> (i32, i32) {
    %c0_i32 = arith.constant 0 : i32
    %c0_i32_0 = arith.constant 0 : i32
    %c0_i32_1 = arith.constant 0 : i32
    return %c0_i32, %c0_i32_0 : i32, i32
  }
  func.func @transform_2(%arg0: i32) -> (i32, i32) {
    %c0_i32 = arith.constant 0 : i32
    %c0_i32_0 = arith.constant 0 : i32
    %c0_i32_1 = arith.constant 0 : i32
    return %c0_i32, %c0_i32_0 : i32, i32
  }
  func.func @transform_3(%arg0: i32) -> (i32, i32) {
    %c0_i32 = arith.constant 0 : i32
    %c0_i32_0 = arith.constant 0 : i32
    %c0_i32_1 = arith.constant 0 : i32
    return %c0_i32, %c0_i32_0 : i32, i32
  }
  func.func @transform_4(%arg0: i32) -> (i32, i32) {
    %c0_i32 = arith.constant 0 : i32
    %c0_i32_0 = arith.constant 0 : i32
    %c0_i32_1 = arith.constant 0 : i32
    return %c0_i32, %c0_i32_0 : i32, i32
  }
  func.func @transform_5(%arg0: i32) -> (i32, i32) {
    %c0_i32 = arith.constant 0 : i32
    %c0_i32_0 = arith.constant 0 : i32
    %c0_i32_1 = arith.constant 0 : i32
    return %c0_i32, %c0_i32_0 : i32, i32
  }
  func.func @transform_6(%arg0: i32) -> (i32, i32) {
    %c0_i32 = arith.constant 0 : i32
    %c0_i32_0 = arith.constant 0 : i32
    %c0_i32_1 = arith.constant 0 : i32
    return %c0_i32, %c0_i32_0 : i32, i32
  }
  func.func @transform_7(%arg0: i32) -> (i32, i32) {
    %c0_i32 = arith.constant 0 : i32
    %c0_i32_0 = arith.constant 0 : i32
    return %arg0, %c0_i32 : i32, i32
  }
}

</mosaic_0001>

<bundles_post_ra>
// kernel: tpu_custom_call.1
= control target key start
LH: loop header
LB: loop body
LE: loop exit
PB: predicated region body
PF: predicated region fallthrough
CT: control target
= control target key end

     0   :  { %s1315_s24 = smov 0   ;;  %s1515_s0 = inlined_call_operand.vmem [shape: f32[256,4], index: 0, kind: input, shape index: {}]   ;;  %s1516_s1 = inlined_call_operand.vmem [shape: f32[4,128], index: 1, kind: input, shape index: {}]   ;;  %s1517_s2 = inlined_call_operand.vmem [shape: f32[1,128], index: 2, kind: input, shape index: {}]   ;;  %s1518_s3 = inlined_call_operand.vmem [shape: f32[128,128], index: 3, kind: input, shape index: {}]   ;;  %s1519_s4 = inlined_call_operand.vmem [shape: f32[1,128], index: 4, kind: input, shape index: {}]   ;;  %s1520_s5 = inlined_call_operand.vmem [shape: f32[128,2], index: 5, kind: input, shape index: {}]   ;;  %s1521_s6 = inlined_call_operand.vmem [shape: f32[1,2], index: 6, kind: input, shape index: {}]   ;;  %s1522_s7 = inlined_call_operand.vmem [shape: f32[256,2], index: 7, kind: output, shape index: {}]  }
   0x1 LB: > { %s945_s25 = sadd.s32 4294967295, %s1273_s24   ;;  %p949_p0 = scmp.ge.s32.totalorder %s1273_s24, 1  ;;  %s1273_s24 = sphi %s1315_s24, %s17_s24  }
   0x2   : > { %p238_p1 = scmp.lt.s32.totalorder %s1273_s24, 3 }
   0x4   : > { %p239_p2 = pnand %p949_p0, %p238_p1 }
   0x5   : > { %v298_v0 = vld [vmem:[%s1516_s1] sm:$0xf] (!%p239_p2)  ;;  %vm355_vm0 = vcmask (!%p239_p2), 1043456   ;;  %s950_s28 = sshll.u32 (!%p239_p2), %s945_s25, 4  ;;  %v521_v2 = vld [vmem:[%s1518_s3 + $0x8] sm:$0xff] (!%p239_p2)  ;;  %v522_v3 = vld [vmem:[%s1518_s3 + $0x10] sm:$0xff] (!%p239_p2) }
   0x6   : > { %242 = sbr.rel (%p239_p2) target bundleno = 698 (0x2ba), region = 48  ;;  %v520_v1 = vld [vmem:[%s1518_s3] sm:$0xff] (!%p239_p2)  ;;  %1057 = vmatprep.subr.msk.mxu0 (!%p239_p2), %vm355_vm0, %v298_v0  ;;  %p271_p3 = scmp.lt.s32.totalorder (!%p239_p2), %s950_s28, 31  ;;  %v523_v4 = vld [vmem:[%s1518_s3 + $0x18] sm:$0xff] (!%p239_p2)  ;;  %v525_v8 = vld [vmem:[%s1518_s3 + $0x28] sm:$0xff] (!%p239_p2)  ;;  %vm306_vm1 = vcmask (!%p239_p2), 31744  }
   0x7   : > { %1058 = vmatpush3.msk.msra.mxu0 (!%p239_p2), %vm355_vm0, %v298_v0  ;;  %v1195_v5 = vpack.c.bf16 (!%p239_p2), %v521_v2, %v520_v1  ;;  %v1199_v6 = vpack.c.bf16 (!%p239_p2), %v523_v4, %v522_v3  ;;  %v524_v7 = vld [vmem:[%s1518_s3 + $0x20] sm:$0xff] (!%p239_p2)  ;;  %v526_v10 = vld [vmem:[%s1518_s3 + $0x30] sm:$0xff] (!%p239_p2)  ;;  %v527_v11 = vld [vmem:[%s1518_s3 + $0x38] sm:$0xff] (!%p239_p2)  ;;  %vm872_vm2 = vcmask (!%p239_p2), 15360  }
   0x8   : > { %v1203_v9 = vpack.c.bf16 (!%p239_p2), %v525_v8, %v524_v7  ;;  %v1207_v16 = vpack.c.bf16 (!%p239_p2), %v527_v11, %v526_v10  ;;  %v528_v18 = vld [vmem:[%s1518_s3 + $0x40] sm:$0xff] (!%p239_p2)  ;;  %v529_v19 = vld [vmem:[%s1518_s3 + $0x48] sm:$0xff] (!%p239_p2)  ;;  %v530_v23 = vld [vmem:[%s1518_s3 + $0x50] sm:$0xff] (!%p239_p2) }
   0x9   : > { %1196 = vmatprep.subr.bf16.mxu1 (!%p239_p2), %v1195_v5  ;;  %v1211_v21 = vpack.c.bf16 (!%p239_p2), %v529_v19, %v528_v18  ;;  %v531_v24 = vld [vmem:[%s1518_s3 + $0x58] sm:$0xff] (!%p239_p2)  ;;  %v532_v28 = vld [vmem:[%s1518_s3 + $0x60] sm:$0xff] (!%p239_p2)  ;;  %v533_v29 = vld [vmem:[%s1518_s3 + $0x68] sm:$0xff] (!%p239_p2) }
   0xa   : > { %1198 = vmatpush3.bf16.msra.mxu1 (!%p239_p2), %v1195_v5  ;;  %v1215_v26 = vpack.c.bf16 (!%p239_p2), %v531_v24, %v530_v23  ;;  %v1219_v31 = vpack.c.bf16 (!%p239_p2), %v533_v29, %v532_v28  ;;  %v534_v38 = vld [vmem:[%s1518_s3 + $0x70] sm:$0xff] (!%p239_p2)  ;;  %v535_v39 = vld [vmem:[%s1518_s3 + $0x78] sm:$0xff] (!%p239_p2)  ;;  %v704_v41 = vld [vmem:[%s1520_s5] sm:$0xff] (!%p239_p2) }
   0xb   : > { %1200 = vmatprep.subr.bf16.mxu1 (!%p239_p2), %v1199_v6  ;;  %v1223_v40 = vpack.c.bf16 (!%p239_p2), %v535_v39, %v534_v38  ;;  %v705_v42 = vld [vmem:[%s1520_s5 + $0x8] sm:$0xff] (!%p239_p2)  ;;  %v706_v43 = vld [vmem:[%s1520_s5 + $0x10] sm:$0xff] (!%p239_p2)  ;;  %v707_v45 = vld [vmem:[%s1520_s5 + $0x18] sm:$0xff] (!%p239_p2) }
   0xc   : > { %v1227_v44 = vpack.c.bf16 (!%p239_p2), %v705_v42, %v704_v41  ;;  %v1231_v46 = vpack.c.bf16 (!%p239_p2), %v707_v45, %v706_v43  ;;  %v708_v47 = vld [vmem:[%s1520_s5 + $0x20] sm:$0xff] (!%p239_p2)  ;;  %v709_v48 = vld [vmem:[%s1520_s5 + $0x28] sm:$0xff] (!%p239_p2)  ;;  %v710_v50 = vld [vmem:[%s1520_s5 + $0x30] sm:$0xff] (!%p239_p2) }
   0xd   : > { %s1524_s28 = smov (!%p271_p3, %s950_s28), 31  ;;  %v1235_v49 = vpack.c.bf16 %v709_v48, %v708_v47  ;;  %v711_v51 = vld [vmem:[%s1520_s5 + $0x38] sm:$0xff]  ;;  %v712_v53 = vld [vmem:[%s1520_s5 + $0x40] sm:$0xff]  ;;  %v713_v54 = vld [vmem:[%s1520_s5 + $0x48] sm:$0xff] }
   0xe   : > { %s951_s18 = sshll.u32 %s1524_s28, 3  ;;  %1202 = vmatpush3.bf16.msra.mxu1 %v1199_v6  ;;  %1228 = vmatprep.subr.bf16.mxu0 %v1227_v44  ;;  %v1239_v52 = vpack.c.bf16 %v711_v51, %v710_v50  ;;  %v1243_v55 = vpack.c.bf16 %v713_v54, %v712_v53  ;;  %v714_v56 = vld [vmem:[%s1520_s5 + $0x50] sm:$0xff]  ;;  %v715_v57 = vld [vmem:[%s1520_s5 + $0x58] sm:$0xff]  ;;  %v716_v59 = vld [vmem:[%s1520_s5 + $0x60] sm:$0xff] }
   0xf   : > { %s1352_s21 = scalar_lea.vmem %s1515_s0, %s951_s18  ;;  %1204 = vmatprep.subr.bf16.mxu1 %v1203_v9  ;;  %v1247_v58 = vpack.c.bf16 %v715_v57, %v714_v56  ;;  %v717_v60 = vld [vmem:[%s1520_s5 + $0x68] sm:$0xff]  ;;  %v954_v62 = vld [vmem:[%s1517_s2] ss:$0 sm:$0xff]  ;;  %v718_v47 = vld [vmem:[%s1520_s5 + $0x70] sm:$0xff]  ;;  %s1478_s23 = scalar_lea.vmem %s1522_s7, %s951_s18 }
  0x10   : > { %v282_v12 = vld [vmem:[%s1352_s21] sm:$0xff]  ;;  %v283_v13 = vld [vmem:[%s1352_s21 + $0x8] sm:$0xff]  ;;  %v284_v14 = vld [vmem:[%s1352_s21 + $0x10] sm:$0xff]  ;;  %v1251_v61 = vpack.c.bf16 %v717_v60, %v716_v59 }
  0x11   : > { %1059 = vmatprep.mubr.msk.f32.mxu0 %vm306_vm1, %v282_v12  ;;  %v285_v15 = vld [vmem:[%s1352_s21 + $0x18] sm:$0xff]  ;;  %v286_v17 = vld [vmem:[%s1352_s21 + $0x20] sm:$0xff]  ;;  %v287_v20 = vld [vmem:[%s1352_s21 + $0x28] sm:$0xff] }
  0x12   : > { %1060 = vmatmul.mubr.msk.f32.vlgmr.msra.gmra.mrb[0].mxu0 %vm306_vm1, %v283_v13  ;;  %1206 = vmatpush3.bf16.msra.mxu1 %v1203_v9  ;;  %v288_v22 = vld [vmem:[%s1352_s21 + $0x30] sm:$0xff]  ;;  %v289_v25 = vld [vmem:[%s1352_s21 + $0x38] sm:$0xff]  ;;  %v290_v27 = vld [vmem:[%s1352_s21 + $0x40] sm:$0xff] }
  0x13   : > { %1062 = vmatprep.mubr.msk.f32.mxu0 %vm306_vm1, %v284_v14  ;;  %1208 = vmatprep.subr.bf16.mxu1 %v1207_v16  ;;  %v291_v30 = vld [vmem:[%s1352_s21 + $0x48] sm:$0xff]  ;;  %v292_v32 = vld [vmem:[%s1352_s21 + $0x50] sm:$0xff]  ;;  %v293_v33 = vld [vmem:[%s1352_s21 + $0x58] sm:$0xff] }
  0x14   : > { %v294_v34 = vld [vmem:[%s1352_s21 + $0x60] sm:$0xff]  ;;  %v295_v35 = vld [vmem:[%s1352_s21 + $0x68] sm:$0xff]  ;;  %v296_v36 = vld [vmem:[%s1352_s21 + $0x70] sm:$0xff]  ;;  %1230 = vmatpush3.bf16.msra.mxu0 %v1227_v44 }
  0x15   : > { %v297_v37 = vld [vmem:[%s1352_s21 + $0x78] sm:$0xff]  ;;  %1232 = vmatprep.subr.bf16.mxu0 %v1231_v46  ;;  %v972_v50 = vld [vmem:[%s1519_s4] ss:$0 sm:$0xff] }
  0x16   : > { %1063 = vmatmul.mubr.msk.f32.gmra.mrb[2].mxu0 %vm306_vm1, %v285_v15  ;;  %1210 = vmatpush3.bf16.msra.mxu1 %v1207_v16  ;;  %v719_v48 = vld [vmem:[%s1520_s5 + $0x78] sm:$0xff] }
  0x17   : > { %1065 = vmatprep.mubr.msk.f32.mxu0 %vm306_vm1, %v286_v17  ;;  %1212 = vmatprep.subr.bf16.mxu1 %v1211_v21 }
  0x18   : > { %1234 = vmatpush3.bf16.msra.mxu0 %v1231_v46 }
  0x19   : > { %1236 = vmatprep.subr.bf16.mxu0 %v1235_v49 }
  0x1a   : > { %1066 = vmatmul.mubr.msk.f32.gmra.mrb[4].mxu0 %vm306_vm1, %v287_v20  ;;  %1214 = vmatpush3.bf16.msra.mxu1 %v1211_v21 }
  0x1b   : > { %1068 = vmatprep.mubr.msk.f32.mxu0 %vm306_vm1, %v288_v22  ;;  %1216 = vmatprep.subr.bf16.mxu1 %v1215_v26 }
  0x1c   : > { %1238 = vmatpush3.bf16.msra.mxu0 %v1235_v49  ;;  %v1255_v49 = vpack.c.bf16 %v719_v48, %v718_v47 }
  0x1d   : > { %1240 = vmatprep.subr.bf16.mxu0 %v1239_v52 }
  0x1e   : > { %1069 = vmatmul.mubr.msk.f32.gmra.mrb[6].mxu0 %vm306_vm1, %v289_v25  ;;  %1218 = vmatpush3.bf16.msra.mxu1 %v1215_v26 }
  0x1f   : > { %1071 = vmatprep.mubr.msk.f32.mxu0 %vm306_vm1, %v290_v27  ;;  %1220 = vmatprep.subr.bf16.mxu1 %v1219_v31 }
  0x20   : > { %1242 = vmatpush3.bf16.msra.mxu0 %v1239_v52 }
  0x21   : > { %1244 = vmatprep.subr.bf16.mxu0 %v1243_v55 }
  0x22   : > { %1072 = vmatmul.mubr.msk.f32.gmra.mrb[8].mxu0 %vm306_vm1, %v291_v30  ;;  %1222 = vmatpush3.bf16.msra.mxu1 %v1219_v31 }
  0x23   : > { %1074 = vmatprep.mubr.msk.f32.mxu0 %vm306_vm1, %v292_v32  ;;  %1224 = vmatprep.subr.bf16.mxu1 %v1223_v40 }
  0x24   : > { %1246 = vmatpush3.bf16.msra.mxu0 %v1243_v55 }
  0x25   : > { %1248 = vmatprep.subr.bf16.mxu0 %v1247_v58 }
  0x26   : > { %1075 = vmatmul.mubr.msk.f32.gmra.mrb[10].mxu0 %vm306_vm1, %v293_v33  ;;  %1226 = vmatpush3.bf16.msra.mxu1 %v1223_v40 }
  0x27   : > { %1077 = vmatprep.mubr.msk.f32.mxu0 %vm306_vm1, %v294_v34 }
  0x28   : > { %1250 = vmatpush3.bf16.msra.mxu0 %v1247_v58 }
  0x29   : > { %1252 = vmatprep.subr.bf16.mxu0 %v1251_v61 }
  0x2a   : > { %1078 = vmatmul.mubr.msk.f32.gmra.mrb[12].mxu0 %vm306_vm1, %v295_v35 }
  0x2b   : > { %1080 = vmatprep.mubr.msk.f32.mxu0 %vm306_vm1, %v296_v36 }
  0x2c   : > { %1254 = vmatpush3.bf16.msra.mxu0 %v1251_v61 }
  0x2d   : > { %1256 = vmatprep.subr.bf16.mxu0 %v1255_v49 }
  0x2e   : > { %1081 = vmatmul.mubr.msk.f32.gmra.mrb[14].mxu0 %vm306_vm1, %v297_v37 }
  0x30   : > { %1258 = vmatpush3.bf16.msra.mxu0 %v1255_v49 }
  0xe5   : > { %v1061_v63 = vpop.f32.mrb[0].mxu0 }
  0xe6   : > { %v431_v0 = vadd.f32 %v1061_v63, %v954_v62  ;;  %v425_v1 = vpop.f32.mrb[1].mxu0 }
  0xe7   : > { %v426_v2 = vadd.f32 %v954_v62, %v425_v1 }
  0xe8   : > { %v505_v5 = vmax.f32 %v431_v0, 0.0 }
  0xe9   : > { %v1064_v3 = vpop.f32.mrb[2].mxu0  ;;  %v504_v4 = vmax.f32 %v426_v2, 0.0 }
  0xea   : > { %v441_v6 = vadd.f32 %v1064_v3, %v954_v62  ;;  %v435_v7 = vpop.f32.mrb[3].mxu0 }
  0xeb   : > { %v436_v8 = vadd.f32 %v954_v62, %v435_v7  ;;  %1115 = vmatprep.mubr.f32.mxu1 %v504_v4 }
  0xec   : > { %1116 = vmatmul.mubr.f32.vlgmr.msra.gmra.mrb[0].mxu1 %v505_v5  ;;  %v507_v11 = vmax.f32 %v441_v6, 0.0 }
  0xed   : > { %v506_v9 = vmax.f32 %v436_v8, 0.0  ;;  %v1067_v10 = vpop.f32.mrb[4].mxu0 }
  0xee   : > { %v451_v12 = vadd.f32 %v1067_v10, %v954_v62  ;;  %v445_v13 = vpop.f32.mrb[5].mxu0 }
  0xef   : > { %v446_v14 = vadd.f32 %v954_v62, %v445_v13  ;;  %1118 = vmatprep.mubr.f32.mxu1 %v506_v9 }
  0xf0   : > { %1119 = vmatmul.mubr.f32.gmra.mrb[2].mxu1 %v507_v11  ;;  %v509_v17 = vmax.f32 %v451_v12, 0.0 }
  0xf1   : > { %v508_v15 = vmax.f32 %v446_v14, 0.0  ;;  %v1070_v16 = vpop.f32.mrb[6].mxu0 }
  0xf2   : > { %v461_v18 = vadd.f32 %v1070_v16, %v954_v62  ;;  %v455_v19 = vpop.f32.mrb[7].mxu0 }
  0xf3   : > { %v456_v20 = vadd.f32 %v954_v62, %v455_v19  ;;  %1121 = vmatprep.mubr.f32.mxu1 %v508_v15 }
  0xf4   : > { %1122 = vmatmul.mubr.f32.gmra.mrb[4].mxu1 %v509_v17  ;;  %v511_v23 = vmax.f32 %v461_v18, 0.0 }
  0xf5   : > { %v510_v21 = vmax.f32 %v456_v20, 0.0  ;;  %v1073_v22 = vpop.f32.mrb[8].mxu0 }
  0xf6   : > { %v471_v24 = vadd.f32 %v1073_v22, %v954_v62  ;;  %v465_v25 = vpop.f32.mrb[9].mxu0 }
  0xf7   : > { %v466_v26 = vadd.f32 %v954_v62, %v465_v25  ;;  %1124 = vmatprep.mubr.f32.mxu1 %v510_v21 }
  0xf8   : > { %1125 = vmatmul.mubr.f32.gmra.mrb[6].mxu1 %v511_v23  ;;  %v513_v29 = vmax.f32 %v471_v24, 0.0 }
  0xf9   : > { %v512_v27 = vmax.f32 %v466_v26, 0.0  ;;  %v1076_v28 = vpop.f32.mrb[10].mxu0 }
  0xfa   : > { %v481_v30 = vadd.f32 %v1076_v28, %v954_v62  ;;  %v475_v31 = vpop.f32.mrb[11].mxu0 }
  0xfb   : > { %v476_v32 = vadd.f32 %v954_v62, %v475_v31  ;;  %1127 = vmatprep.mubr.f32.mxu1 %v512_v27 }
  0xfc   : > { %1128 = vmatmul.mubr.f32.gmra.mrb[8].mxu1 %v513_v29  ;;  %v515_v35 = vmax.f32 %v481_v30, 0.0 }
  0xfd   : > { %v514_v33 = vmax.f32 %v476_v32, 0.0  ;;  %v1079_v34 = vpop.f32.mrb[12].mxu0 }
  0xfe   : > { %v491_v36 = vadd.f32 %v1079_v34, %v954_v62  ;;  %v485_v37 = vpop.f32.mrb[13].mxu0 }
  0xff   : > { %v486_v38 = vadd.f32 %v954_v62, %v485_v37  ;;  %1130 = vmatprep.mubr.f32.mxu1 %v514_v33 }
 0x100   : > { %1131 = vmatmul.mubr.f32.gmra.mrb[10].mxu1 %v515_v35  ;;  %v517_v41 = vmax.f32 %v491_v36, 0.0  ;;  %v973_v35 = vld [vmem:[%s1521_s6] ss:$0 sm:$0xff] }
 0x101   : > { %v516_v39 = vmax.f32 %v486_v38, 0.0  ;;  %v1082_v40 = vpop.f32.mrb[14].mxu0 }
 0x102   : > { %v501_v42 = vadd.f32 %v1082_v40, %v954_v62  ;;  %v495_v43 = vpop.f32.mrb[15].mxu0 }
 0x103   : > { %v496_v44 = vadd.f32 %v954_v62, %v495_v43  ;;  %1133 = vmatprep.mubr.f32.mxu1 %v516_v39 }
 0x104   : > { %1134 = vmatmul.mubr.f32.gmra.mrb[12].mxu1 %v517_v41  ;;  %v519_v46 = vmax.f32 %v501_v42, 0.0 }
 0x105   : > { %v518_v45 = vmax.f32 %v496_v44, 0.0 }
 0x107   : > { %1136 = vmatprep.mubr.f32.mxu1 %v518_v45 }
 0x108   : > { %1137 = vmatmul.mubr.f32.gmra.mrb[14].mxu1 %v519_v46 }
 0x1bf   : > { %v1117_v51 = vpop.f32.mrb[0].mxu1 }
 0x1c0   : > { %v615_v52 = vadd.f32 %v1117_v51, %v972_v50  ;;  %v609_v53 = vpop.f32.mrb[1].mxu1 }
 0x1c1   : > { %v610_v54 = vadd.f32 %v972_v50, %v609_v53 }
 0x1c2   : > { %v689_v57 = vmax.f32 %v615_v52, 0.0 }
 0x1c3   : > { %v688_v55 = vmax.f32 %v610_v54, 0.0  ;;  %v1120_v56 = vpop.f32.mrb[2].mxu1 }
 0x1c4   : > { %v625_v58 = vadd.f32 %v1120_v56, %v972_v50  ;;  %v619_v59 = vpop.f32.mrb[3].mxu1 }
 0x1c5   : > { %v620_v60 = vadd.f32 %v972_v50, %v619_v59  ;;  %1171 = vmatprep.mubr.f32.mxu0 %v688_v55 }
 0x1c6   : > { %1172 = vmatmul.mubr.f32.vlgmr.msra.gmra.mrb[16].mxu0 %v689_v57  ;;  %v691_v63 = vmax.f32 %v625_v58, 0.0 }
 0x1c7   : > { %v690_v61 = vmax.f32 %v620_v60, 0.0  ;;  %v1123_v62 = vpop.f32.mrb[4].mxu1 }
 0x1c8   : > { %v635_v0 = vadd.f32 %v1123_v62, %v972_v50  ;;  %v629_v1 = vpop.f32.mrb[5].mxu1 }
 0x1c9   : > { %v630_v2 = vadd.f32 %v972_v50, %v629_v1  ;;  %1174 = vmatprep.mubr.f32.mxu0 %v690_v61 }
 0x1ca   : > { %1175 = vmatmul.mubr.f32.gmra.mrb[18].mxu0 %v691_v63  ;;  %v693_v5 = vmax.f32 %v635_v0, 0.0 }
 0x1cb   : > { %v692_v3 = vmax.f32 %v630_v2, 0.0  ;;  %v1126_v4 = vpop.f32.mrb[6].mxu1 }
 0x1cc   : > { %v645_v6 = vadd.f32 %v1126_v4, %v972_v50  ;;  %v639_v7 = vpop.f32.mrb[7].mxu1 }
 0x1cd   : > { %v640_v8 = vadd.f32 %v972_v50, %v639_v7  ;;  %1177 = vmatprep.mubr.f32.mxu0 %v692_v3 }
 0x1ce   : > { %1178 = vmatmul.mubr.f32.gmra.mrb[20].mxu0 %v693_v5  ;;  %v695_v11 = vmax.f32 %v645_v6, 0.0 }
 0x1cf   : > { %v694_v9 = vmax.f32 %v640_v8, 0.0  ;;  %v1129_v10 = vpop.f32.mrb[8].mxu1 }
 0x1d0   : > { %v655_v12 = vadd.f32 %v1129_v10, %v972_v50  ;;  %v649_v13 = vpop.f32.mrb[9].mxu1 }
 0x1d1   : > { %v650_v14 = vadd.f32 %v972_v50, %v649_v13  ;;  %1180 = vmatprep.mubr.f32.mxu0 %v694_v9 }
 0x1d2   : > { %1181 = vmatmul.mubr.f32.gmra.mrb[22].mxu0 %v695_v11  ;;  %v697_v17 = vmax.f32 %v655_v12, 0.0 }
 0x1d3   : > { %v696_v15 = vmax.f32 %v650_v14, 0.0  ;;  %v1132_v16 = vpop.f32.mrb[10].mxu1 }
 0x1d4   : > { %v665_v18 = vadd.f32 %v1132_v16, %v972_v50  ;;  %v659_v19 = vpop.f32.mrb[11].mxu1 }
 0x1d5   : > { %v660_v20 = vadd.f32 %v972_v50, %v659_v19  ;;  %1183 = vmatprep.mubr.f32.mxu0 %v696_v15 }
 0x1d6   : > { %1184 = vmatmul.mubr.f32.gmra.mrb[24].mxu0 %v697_v17  ;;  %v699_v23 = vmax.f32 %v665_v18, 0.0 }
 0x1d7   : > { %v698_v21 = vmax.f32 %v660_v20, 0.0  ;;  %v1135_v22 = vpop.f32.mrb[12].mxu1 }
 0x1d8   : > { %v675_v24 = vadd.f32 %v1135_v22, %v972_v50  ;;  %v669_v25 = vpop.f32.mrb[13].mxu1 }
 0x1d9   : > { %v670_v26 = vadd.f32 %v972_v50, %v669_v25  ;;  %1186 = vmatprep.mubr.f32.mxu0 %v698_v21 }
 0x1da   : > { %1187 = vmatmul.mubr.f32.gmra.mrb[26].mxu0 %v699_v23  ;;  %v701_v29 = vmax.f32 %v675_v24, 0.0 }
 0x1db   : > { %v700_v27 = vmax.f32 %v670_v26, 0.0  ;;  %v1138_v28 = vpop.f32.mrb[14].mxu1 }
 0x1dc   : > { %v685_v30 = vadd.f32 %v1138_v28, %v972_v50  ;;  %v679_v31 = vpop.f32.mrb[15].mxu1 }
 0x1dd   : > { %v680_v32 = vadd.f32 %v972_v50, %v679_v31  ;;  %1189 = vmatprep.mubr.f32.mxu0 %v700_v27 }
 0x1de   : > { %1190 = vmatmul.mubr.f32.gmra.mrb[28].mxu0 %v701_v29  ;;  %v703_v34 = vmax.f32 %v685_v30, 0.0 }
 0x1df   : > { %v702_v33 = vmax.f32 %v680_v32, 0.0 }
 0x1e1   : > { %1192 = vmatprep.mubr.f32.mxu0 %v702_v33 }
 0x1e2   : > { %1193 = vmatmul.mubr.f32.gmra.mrb[30].mxu0 %v703_v34 }
 0x299   : > { %v1173_v36 = vpop.f32.mrb[16].mxu0 }
 0x29a   : > { %v799_v37 = vadd.f32 %v1173_v36, %v973_v35  ;;  %v793_v38 = vpop.f32.mrb[17].mxu0 }
 0x29b   : > { %v794_v39 = vadd.f32 %v973_v35, %v793_v38 }
 0x29c   : > { %874 = vst.msk [vmem:[%s1478_s23 + $0x8] sm:$0xff] %vm872_vm2, %v799_v37 }
 0x29d   : > { %873 = vst.msk [vmem:[%s1478_s23] sm:$0xff] %vm872_vm2, %v794_v39  ;;  %v1176_v40 = vpop.f32.mrb[18].mxu0 }
 0x29e   : > { %v809_v41 = vadd.f32 %v1176_v40, %v973_v35  ;;  %v803_v42 = vpop.f32.mrb[19].mxu0 }
 0x29f   : > { %v804_v43 = vadd.f32 %v973_v35, %v803_v42 }
 0x2a0   : > { %876 = vst.msk [vmem:[%s1478_s23 + $0x18] sm:$0xff] %vm872_vm2, %v809_v41 }
 0x2a1   : > { %875 = vst.msk [vmem:[%s1478_s23 + $0x10] sm:$0xff] %vm872_vm2, %v804_v43  ;;  %v1179_v44 = vpop.f32.mrb[20].mxu0 }
 0x2a2   : > { %v819_v45 = vadd.f32 %v1179_v44, %v973_v35  ;;  %v813_v46 = vpop.f32.mrb[21].mxu0 }
 0x2a3   : > { %v814_v47 = vadd.f32 %v973_v35, %v813_v46 }
 0x2a4   : > { %878 = vst.msk [vmem:[%s1478_s23 + $0x28] sm:$0xff] %vm872_vm2, %v819_v45 }
 0x2a5   : > { %877 = vst.msk [vmem:[%s1478_s23 + $0x20] sm:$0xff] %vm872_vm2, %v814_v47  ;;  %v1182_v48 = vpop.f32.mrb[22].mxu0 }
 0x2a6   : > { %v829_v49 = vadd.f32 %v1182_v48, %v973_v35  ;;  %v823_v50 = vpop.f32.mrb[23].mxu0 }
 0x2a7   : > { %v824_v51 = vadd.f32 %v973_v35, %v823_v50 }
 0x2a8   : > { %880 = vst.msk [vmem:[%s1478_s23 + $0x38] sm:$0xff] %vm872_vm2, %v829_v49 }
 0x2a9   : > { %879 = vst.msk [vmem:[%s1478_s23 + $0x30] sm:$0xff] %vm872_vm2, %v824_v51  ;;  %v1185_v52 = vpop.f32.mrb[24].mxu0 }
 0x2aa   : > { %v839_v53 = vadd.f32 %v1185_v52, %v973_v35  ;;  %v833_v54 = vpop.f32.mrb[25].mxu0 }
 0x2ab   : > { %v834_v55 = vadd.f32 %v973_v35, %v833_v54 }
 0x2ac   : > { %882 = vst.msk [vmem:[%s1478_s23 + $0x48] sm:$0xff] %vm872_vm2, %v839_v53 }
 0x2ad   : > { %881 = vst.msk [vmem:[%s1478_s23 + $0x40] sm:$0xff] %vm872_vm2, %v834_v55  ;;  %v1188_v56 = vpop.f32.mrb[26].mxu0 }
 0x2ae   : > { %v849_v57 = vadd.f32 %v1188_v56, %v973_v35  ;;  %v843_v58 = vpop.f32.mrb[27].mxu0 }
 0x2af   : > { %v844_v59 = vadd.f32 %v973_v35, %v843_v58 }
 0x2b0   : > { %884 = vst.msk [vmem:[%s1478_s23 + $0x58] sm:$0xff] %vm872_vm2, %v849_v57 }
 0x2b1   : > { %883 = vst.msk [vmem:[%s1478_s23 + $0x50] sm:$0xff] %vm872_vm2, %v844_v59  ;;  %v1191_v60 = vpop.f32.mrb[28].mxu0 }
 0x2b2   : > { %v859_v61 = vadd.f32 %v1191_v60, %v973_v35  ;;  %v853_v62 = vpop.f32.mrb[29].mxu0 }
 0x2b3   : > { %v854_v63 = vadd.f32 %v973_v35, %v853_v62 }
 0x2b4   : > { %886 = vst.msk [vmem:[%s1478_s23 + $0x68] sm:$0xff] %vm872_vm2, %v859_v61 }
 0x2b5   : > { %885 = vst.msk [vmem:[%s1478_s23 + $0x60] sm:$0xff] %vm872_vm2, %v854_v63  ;;  %v1194_v0 = vpop.f32.mrb[30].mxu0 }
 0x2b6   : > { %v869_v1 = vadd.f32 %v1194_v0, %v973_v35  ;;  %v863_v2 = vpop.f32.mrb[31].mxu0 }
 0x2b7   : > { %v864_v3 = vadd.f32 %v973_v35, %v863_v2 }
 0x2b8   : > { %888 = vst.msk [vmem:[%s1478_s23 + $0x78] sm:$0xff] %vm872_vm2, %v869_v1 }
 0x2b9   : > { %887 = vst.msk [vmem:[%s1478_s23 + $0x70] sm:$0xff] %vm872_vm2, %v864_v3 }
 0x2ba PF: > { %s17_s24 = sadd.s32 1, %s1273_s24  }
 0x2bb   : > { %p14_p4 = scmp.ge.s32.totalorder %s17_s24, 4  }
 0x2bd   :  { %16 = sbr.rel (!%p14_p4) target bundleno = 1 (0x1), region = 78 }

</bundles_post_ra>
